<compile_context>
chip_gen: v7x
topology: tpu7x:2x2x1
jax: 0.10.0
libtpu: 0.0.40
codegen_flags: <defaults>
</compile_context>

<pallas_src>
import jax
import jax.numpy as jnp
from jax.experimental import pallas as pl
from jax.experimental.pallas import tpu as pltpu


# ------------------------- fused LSTM-stack + head kernel --------------------
def _make_fused_kernel(T, F, H, Fo, O, num_layers):
    """Fused [LSTM x num_layers] -> Linear(L,L) -> Conv1d(F,Fo,k=1) -> split_linear."""

    def kernel(*refs):
        x_ref = refs[0]
        lstm_refs = refs[1:1 + 3 * num_layers]
        (w1t_ref, bl1_ref, w2_ref, b2_ref,
         w3p_ref, mask_ref, b3f_ref) = refs[1 + 3 * num_layers:1 + 3 * num_layers + 7]
        out_ref = refs[-2]
        seq_scr = refs[-1]                         # VMEM (T*F, H)

        seq = x_ref[...]                           # (T*F, I); layer-0 input
        for layer in range(num_layers):
            wih_ref, whh_ref, b_ref = lstm_refs[3 * layer:3 * layer + 3]
            # Batched input projection for all T steps (one MXU matmul, bias folded
            # in) -- off the serial recurrence path.
            xp = (jnp.dot(seq, wih_ref[...], preferred_element_type=jnp.float32)
                  + b_ref[...])                    # (T*F, 4H)
            whh = whh_ref[...]                     # (H, 4H)
            h = jnp.zeros((F, H), jnp.float32)
            c = jnp.zeros((F, H), jnp.float32)
            for t in range(T):                     # fully unrolled recurrence
                g = xp[t * F:(t + 1) * F, :]       # (F, 4H)
                if t > 0:
                    g = g + jnp.dot(h, whh, preferred_element_type=jnp.float32)
                i = jax.nn.sigmoid(g[:, 0 * H:1 * H])
                f = jax.nn.sigmoid(g[:, 1 * H:2 * H])
                gg = jnp.tanh(g[:, 2 * H:3 * H])
                o = jax.nn.sigmoid(g[:, 3 * H:4 * H])
                c = f * c + i * gg
                h = o * jnp.tanh(c)
                seq_scr[t * F:(t + 1) * F, :] = h  # stash for next layer / head
            seq = seq_scr[...]                     # (T*F, H)

        # Fused head: Linear(L,L) -> Conv1d(F,Fo,k=1) -> split_linear(L,O).
        w1t = w1t_ref[...]                         # (L, L)
        bl1 = bl1_ref[...]                         # (1, L)
        w2 = w2_ref[...]                           # (Fo, F)
        b2 = b2_ref[...]                           # (Fo, 1)
        w3p = w3p_ref[...]                         # (L, Fo*O),  w3p[l, c*O+o] = w3[c,o,l]
        msk = mask_ref[...]                        # (Fo, Fo*O), 1 where row c owns column block c
        b3f = b3f_ref[...]                         # (1, Fo*O)
        for t in range(T):
            ht = seq[t * F:(t + 1) * F, :]                                      # (F, L)
            t1 = jnp.dot(ht, w1t, preferred_element_type=jnp.float32) + bl1     # (F, L)
            t2 = jnp.dot(w2, t1, preferred_element_type=jnp.float32) + b2       # (Fo, L)
            # split_linear on the MXU: full[c, c'*O+o] = sum_l t2[c,l] * w3[c',o,l];
            # block-diagonal (c == c') entries are picked with a 0/1 mask.
            full = jnp.dot(t2, w3p, preferred_element_type=jnp.float32)         # (Fo, Fo*O)
            row = jnp.sum(full * msk, axis=0, keepdims=True) + b3f              # (1, Fo*O)
            out_ref[t:t + 1, :] = row.astype(out_ref.dtype)

    return kernel


# --------------------------------- wrapper -----------------------------------
def model_forward(x, params):
    """x: (N, L, F) -> (N, O, Fo), matching the PyTorch module's forward."""
    N, L, F = x.shape
    Fo, O = params["b3"].shape
    num_layers = len(params["lstm"])
    H = params["lstm"][0][1].shape[1]              # hidden size (== L)

    # (N, L, F) -> (N, F, L); flatten the LSTM (time, batch) = (N, F) axes into rows.
    x2d = jnp.transpose(x, (0, 2, 1)).reshape(N * F, L)

    args = [x2d]
    for (wih, whh, bih, bhh) in params["lstm"]:
        args += [wih.T, whh.T, (bih + bhh)[None, :]]

    # Head weights, rearranged once on the host/XLA side for MXU-friendly layouts.
    w3 = params["w3"]                                               # (Fo, O, L)
    w3p = jnp.transpose(w3, (2, 0, 1)).reshape(L, Fo * O)           # (L, Fo*O)
    mask = jnp.repeat(jnp.eye(Fo, dtype=jnp.float32), O, axis=1)    # (Fo, Fo*O)
    b3f = params["b3"].reshape(1, Fo * O)
    args += [params["w1"].T, params["b1"][None, :],
             params["w2"], params["b2"][:, None],
             w3p, mask, b3f]

    kernel = _make_fused_kernel(N, F, H, Fo, O, num_layers)
    out_flat = pl.pallas_call(
        kernel,
        out_shape=jax.ShapeDtypeStruct((N, Fo * O), jnp.float32),
        grid_spec=pltpu.PrefetchScalarGridSpec(
            num_scalar_prefetch=0,
            grid=(1,),                                    # single fused invocation
            in_specs=[pl.BlockSpec(tuple(a.shape), lambda i: (0, 0)) for a in args],
            out_specs=pl.BlockSpec((N, Fo * O), lambda i: (0, 0)),
            scratch_shapes=[pltpu.VMEM((N * F, H), jnp.float32)],
        ),
        compiler_params=pltpu.CompilerParams(
            dimension_semantics=("arbitrary",)),          # recurrence is sequential
    )(*args)

    return jnp.transpose(out_flat.reshape(N, Fo, O), (0, 2, 1))     # (N, O, Fo)


# ------------------------- pure-JAX reference (check) ------------------------
def reference(x, params):
    y = jnp.transpose(x, (0, 2, 1))                  # (N, F, L)
    for (wih, whh, bih, bhh) in params["lstm"]:
        H = whh.shape[1]

        def step(carry, xt):
            h, c = carry
            gates = xt @ wih.T + bih + h @ whh.T + bhh
            i, f, g, o = jnp.split(gates, 4, axis=-1)
            i = jax.nn.sigmoid(i)
            f = jax.nn.sigmoid(f)
            g = jnp.tanh(g)
            o = jax.nn.sigmoid(o)
            c = f * c + i * g
            h = o * jnp.tanh(c)
            return (h, c), h

        h0 = jnp.zeros((y.shape[1], H), jnp.float32)
        c0 = jnp.zeros_like(h0)
        (_, _), y = jax.lax.scan(step, (h0, c0), y)
    y = y @ params["w1"].T + params["b1"]
    y = jnp.einsum('of,nfl->nol', params["w2"], y) + params["b2"][None, :, None]
    y = jnp.einsum('col,ncl->nco', params["w3"], y) + params["b3"][None]
    return jnp.transpose(y, (0, 2, 1))


# --------------------------------- main -------------------------------------
if __name__ == "__main__":
    # Small shapes consistent with the module:
    N, L, F = 4, 16, 4          # batch, input_len, input_feature
    Fo, O = 3, 8                # output_feature, output_len
    num_layers = 2              # model_type 'm'

    key = jax.random.PRNGKey(0)
    keys = iter(jax.random.split(key, 64))

    def uinit(k, shape, fan):
        bound = 1.0 / jnp.sqrt(fan)
        return jax.random.uniform(k, shape, jnp.float32, -bound, bound)

    lstm_params = []
    for layer in range(num_layers):
        wih = uinit(next(keys), (4 * L, L), L)       # input_size == hidden_size == L
        whh = uinit(next(keys), (4 * L, L), L)
        bih = uinit(next(keys), (4 * L,), L)
        bhh = uinit(next(keys), (4 * L,), L)
        lstm_params.append((wih, whh, bih, bhh))

    params = {
        "lstm": lstm_params,
        "w1": uinit(next(keys), (L, L), L),          # Linear(L, L)
        "b1": uinit(next(keys), (L,), L),
        "w2": uinit(next(keys), (Fo, F), F),         # Conv1d(F, Fo, k=1) weight squeezed
        "b2": uinit(next(keys), (Fo,), F),
        "w3": uinit(next(keys), (Fo, O, L), L),      # split_linear: per-channel Linear(L, O)
        "b3": uinit(next(keys), (Fo, O), L),
    }

    x = jax.random.normal(next(keys), (N, L, F), jnp.float32)

    fwd = jax.jit(model_forward)
    out = jax.block_until_ready(fwd(x, params))

    ref = reference(x, params)
    assert out.shape == (N, O, Fo), out.shape
    err = float(jnp.max(jnp.abs(out - ref)))
    assert jnp.allclose(out, ref, rtol=1e-4, atol=1e-4), err

    print("KERNEL_OK")
</pallas_src>

<mosaic_0001>
module attributes {stable_mosaic.version = 11 : i64} {
  func.func @kernel(%arg0: i32, %arg1: memref<16x16xf32, #tpu.memory_space<vmem>>, %arg2: memref<16x64xf32, #tpu.memory_space<vmem>>, %arg3: memref<16x64xf32, #tpu.memory_space<vmem>>, %arg4: memref<1x64xf32, #tpu.memory_space<vmem>>, %arg5: memref<16x64xf32, #tpu.memory_space<vmem>>, %arg6: memref<16x64xf32, #tpu.memory_space<vmem>>, %arg7: memref<1x64xf32, #tpu.memory_space<vmem>>, %arg8: memref<16x16xf32, #tpu.memory_space<vmem>>, %arg9: memref<1x16xf32, #tpu.memory_space<vmem>>, %arg10: memref<3x4xf32, #tpu.memory_space<vmem>>, %arg11: memref<3x1xf32, #tpu.memory_space<vmem>>, %arg12: memref<16x24xf32, #tpu.memory_space<vmem>>, %arg13: memref<3x24xf32, #tpu.memory_space<vmem>>, %arg14: memref<1x24xf32, #tpu.memory_space<vmem>>, %arg15: memref<4x24xf32, #tpu.memory_space<vmem>>, %arg16: memref<16x16xf32, #tpu.memory_space<vmem>>) attributes {dimension_semantics = [#tpu.dimension_semantics<arbitrary>], iteration_bounds = array<i64: 1>, scalar_prefetch = 0 : i64, scratch_operands = 1 : i64, tpu.core_type = #tpu.core_type<tc>, window_params = [{pipeline_mode = #tpu.pipeline_mode<synchronous>, transform_indices = @transform_0, window_bounds = array<i64: 16, 16>}, {pipeline_mode = #tpu.pipeline_mode<synchronous>, transform_indices = @transform_1, window_bounds = array<i64: 16, 64>}, {pipeline_mode = #tpu.pipeline_mode<synchronous>, transform_indices = @transform_2, window_bounds = array<i64: 16, 64>}, {pipeline_mode = #tpu.pipeline_mode<synchronous>, transform_indices = @transform_3, window_bounds = array<i64: 1, 64>}, {pipeline_mode = #tpu.pipeline_mode<synchronous>, transform_indices = @transform_4, window_bounds = array<i64: 16, 64>}, {pipeline_mode = #tpu.pipeline_mode<synchronous>, transform_indices = @transform_5, window_bounds = array<i64: 16, 64>}, {pipeline_mode = #tpu.pipeline_mode<synchronous>, transform_indices = @transform_6, window_bounds = array<i64: 1, 64>}, {pipeline_mode = #tpu.pipeline_mode<synchronous>, transform_indices = @transform_7, window_bounds = array<i64: 16, 16>}, {pipeline_mode = #tpu.pipeline_mode<synchronous>, transform_indices = @transform_8, window_bounds = array<i64: 1, 16>}, {pipeline_mode = #tpu.pipeline_mode<synchronous>, transform_indices = @transform_9, window_bounds = array<i64: 3, 4>}, {pipeline_mode = #tpu.pipeline_mode<synchronous>, transform_indices = @transform_10, window_bounds = array<i64: 3, 1>}, {pipeline_mode = #tpu.pipeline_mode<synchronous>, transform_indices = @transform_11, window_bounds = array<i64: 16, 24>}, {pipeline_mode = #tpu.pipeline_mode<synchronous>, transform_indices = @transform_12, window_bounds = array<i64: 3, 24>}, {pipeline_mode = #tpu.pipeline_mode<synchronous>, transform_indices = @transform_13, window_bounds = array<i64: 1, 24>}, {pipeline_mode = #tpu.pipeline_mode<synchronous>, transform_indices = @transform_14, window_bounds = array<i64: 4, 24>}]} {
    %c0 = arith.constant 0 : index
    %c0_0 = arith.constant 0 : index
    %0 = vector.load %arg1[%c0, %c0_0] : memref<16x16xf32, #tpu.memory_space<vmem>>, vector<16x16xf32>
    %c0_1 = arith.constant 0 : index
    %c0_2 = arith.constant 0 : index
    %1 = vector.load %arg2[%c0_1, %c0_2] : memref<16x64xf32, #tpu.memory_space<vmem>>, vector<16x64xf32>
    %cst = arith.constant dense<0.000000e+00> : vector<16x64xf32>
    %2 = tpu.matmul %0, %1, %cst {dimension_numbers = #tpu.dot_dimension_numbers<[1], [0], [0], [1], [0, 0, 1, 1], [], []>} : vector<16x16xf32>, vector<16x64xf32>, vector<16x64xf32> -> vector<16x64xf32>
    %c0_3 = arith.constant 0 : index
    %c0_4 = arith.constant 0 : index
    %3 = vector.load %arg4[%c0_3, %c0_4] : memref<1x64xf32, #tpu.memory_space<vmem>>, vector<1x64xf32>
    %4 = vector.broadcast %3 : vector<1x64xf32> to vector<16x64xf32>
    %5 = arith.addf %2, %4 : vector<16x64xf32>
    %c0_5 = arith.constant 0 : index
    %c0_6 = arith.constant 0 : index
    %6 = vector.load %arg3[%c0_5, %c0_6] : memref<16x64xf32, #tpu.memory_space<vmem>>, vector<16x64xf32>
    %cst_7 = arith.constant 0.000000e+00 : f32
    %7 = vector.broadcast %cst_7 : f32 to vector<4x16xf32>
    %8 = vector.extract_strided_slice %5 {offsets = [0, 0], sizes = [4, 64], strides = [1, 1]} : vector<16x64xf32> to vector<4x64xf32>
    %9 = vector.extract_strided_slice %8 {offsets = [0, 0], sizes = [4, 16], strides = [1, 1]} : vector<4x64xf32> to vector<4x16xf32>
    %10 = arith.negf %9 : vector<4x16xf32>
    %11 = math.exp %10 : vector<4x16xf32>
    %cst_8 = arith.constant 1.000000e+00 : f32
    %12 = vector.broadcast %cst_8 : f32 to vector<4x16xf32>
    %13 = arith.addf %12, %11 : vector<4x16xf32>
    %14 = arith.divf %12, %13 : vector<4x16xf32>
    %15 = vector.extract_strided_slice %8 {offsets = [0, 16], sizes = [4, 16], strides = [1, 1]} : vector<4x64xf32> to vector<4x16xf32>
    %16 = arith.negf %15 : vector<4x16xf32>
    %17 = math.exp %16 : vector<4x16xf32>
    %cst_9 = arith.constant 1.000000e+00 : f32
    %18 = vector.broadcast %cst_9 : f32 to vector<4x16xf32>
    %19 = arith.addf %18, %17 : vector<4x16xf32>
    %20 = arith.divf %18, %19 : vector<4x16xf32>
    %21 = vector.extract_strided_slice %8 {offsets = [0, 32], sizes = [4, 16], strides = [1, 1]} : vector<4x64xf32> to vector<4x16xf32>
    %22 = math.tanh %21 : vector<4x16xf32>
    %23 = vector.extract_strided_slice %8 {offsets = [0, 48], sizes = [4, 16], strides = [1, 1]} : vector<4x64xf32> to vector<4x16xf32>
    %24 = arith.negf %23 : vector<4x16xf32>
    %25 = math.exp %24 : vector<4x16xf32>
    %cst_10 = arith.constant 1.000000e+00 : f32
    %26 = vector.broadcast %cst_10 : f32 to vector<4x16xf32>
    %27 = arith.addf %26, %25 : vector<4x16xf32>
    %28 = arith.divf %26, %27 : vector<4x16xf32>
    %29 = arith.mulf %20, %7 : vector<4x16xf32>
    %30 = arith.mulf %14, %22 : vector<4x16xf32>
    %31 = arith.addf %29, %30 : vector<4x16xf32>
    %32 = math.tanh %31 : vector<4x16xf32>
    %33 = arith.mulf %28, %32 : vector<4x16xf32>
    %c0_11 = arith.constant 0 : index
    %c0_12 = arith.constant 0 : index
    %34 = vector.load %arg16[%c0_11, %c0_12] : memref<16x16xf32, #tpu.memory_space<vmem>>, vector<4x16xf32>
    tpu.vector_store %arg16[%c0_11, %c0_12], %33 {strides = array<i32>} : memref<16x16xf32, #tpu.memory_space<vmem>>, vector<4x16xf32>,
    %35 = vector.extract_strided_slice %5 {offsets = [4, 0], sizes = [4, 64], strides = [1, 1]} : vector<16x64xf32> to vector<4x64xf32>
    %cst_13 = arith.constant dense<0.000000e+00> : vector<4x64xf32>
    %36 = tpu.matmul %33, %6, %cst_13 {dimension_numbers = #tpu.dot_dimension_numbers<[1], [0], [0], [1], [0, 0, 1, 1], [], []>} : vector<4x16xf32>, vector<16x64xf32>, vector<4x64xf32> -> vector<4x64xf32>
    %37 = arith.addf %35, %36 : vector<4x64xf32>
    %38 = vector.extract_strided_slice %37 {offsets = [0, 0], sizes = [4, 16], strides = [1, 1]} : vector<4x64xf32> to vector<4x16xf32>
    %39 = arith.negf %38 : vector<4x16xf32>
    %40 = math.exp %39 : vector<4x16xf32>
    %cst_14 = arith.constant 1.000000e+00 : f32
    %41 = vector.broadcast %cst_14 : f32 to vector<4x16xf32>
    %42 = arith.addf %41, %40 : vector<4x16xf32>
    %43 = arith.divf %41, %42 : vector<4x16xf32>
    %44 = vector.extract_strided_slice %37 {offsets = [0, 16], sizes = [4, 16], strides = [1, 1]} : vector<4x64xf32> to vector<4x16xf32>
    %45 = arith.negf %44 : vector<4x16xf32>
    %46 = math.exp %45 : vector<4x16xf32>
    %cst_15 = arith.constant 1.000000e+00 : f32
    %47 = vector.broadcast %cst_15 : f32 to vector<4x16xf32>
    %48 = arith.addf %47, %46 : vector<4x16xf32>
    %49 = arith.divf %47, %48 : vector<4x16xf32>
    %50 = vector.extract_strided_slice %37 {offsets = [0, 32], sizes = [4, 16], strides = [1, 1]} : vector<4x64xf32> to vector<4x16xf32>
    %51 = math.tanh %50 : vector<4x16xf32>
    %52 = vector.extract_strided_slice %37 {offsets = [0, 48], sizes = [4, 16], strides = [1, 1]} : vector<4x64xf32> to vector<4x16xf32>
    %53 = arith.negf %52 : vector<4x16xf32>
    %54 = math.exp %53 : vector<4x16xf32>
    %cst_16 = arith.constant 1.000000e+00 : f32
    %55 = vector.broadcast %cst_16 : f32 to vector<4x16xf32>
    %56 = arith.addf %55, %54 : vector<4x16xf32>
    %57 = arith.divf %55, %56 : vector<4x16xf32>
    %58 = arith.mulf %49, %31 : vector<4x16xf32>
    %59 = arith.mulf %43, %51 : vector<4x16xf32>
    %60 = arith.addf %58, %59 : vector<4x16xf32>
    %61 = math.tanh %60 : vector<4x16xf32>
    %62 = arith.mulf %57, %61 : vector<4x16xf32>
    %c4 = arith.constant 4 : index
    %c0_17 = arith.constant 0 : index
    %63 = vector.load %arg16[%c4, %c0_17] : memref<16x16xf32, #tpu.memory_space<vmem>>, vector<4x16xf32>
    tpu.vector_store %arg16[%c4, %c0_17], %62 {strides = array<i32>} : memref<16x16xf32, #tpu.memory_space<vmem>>, vector<4x16xf32>,
    %64 = vector.extract_strided_slice %5 {offsets = [8, 0], sizes = [4, 64], strides = [1, 1]} : vector<16x64xf32> to vector<4x64xf32>
    %cst_18 = arith.constant dense<0.000000e+00> : vector<4x64xf32>
    %65 = tpu.matmul %62, %6, %cst_18 {dimension_numbers = #tpu.dot_dimension_numbers<[1], [0], [0], [1], [0, 0, 1, 1], [], []>} : vector<4x16xf32>, vector<16x64xf32>, vector<4x64xf32> -> vector<4x64xf32>
    %66 = arith.addf %64, %65 : vector<4x64xf32>
    %67 = vector.extract_strided_slice %66 {offsets = [0, 0], sizes = [4, 16], strides = [1, 1]} : vector<4x64xf32> to vector<4x16xf32>
    %68 = arith.negf %67 : vector<4x16xf32>
    %69 = math.exp %68 : vector<4x16xf32>
    %cst_19 = arith.constant 1.000000e+00 : f32
    %70 = vector.broadcast %cst_19 : f32 to vector<4x16xf32>
    %71 = arith.addf %70, %69 : vector<4x16xf32>
    %72 = arith.divf %70, %71 : vector<4x16xf32>
    %73 = vector.extract_strided_slice %66 {offsets = [0, 16], sizes = [4, 16], strides = [1, 1]} : vector<4x64xf32> to vector<4x16xf32>
    %74 = arith.negf %73 : vector<4x16xf32>
    %75 = math.exp %74 : vector<4x16xf32>
    %cst_20 = arith.constant 1.000000e+00 : f32
    %76 = vector.broadcast %cst_20 : f32 to vector<4x16xf32>
    %77 = arith.addf %76, %75 : vector<4x16xf32>
    %78 = arith.divf %76, %77 : vector<4x16xf32>
    %79 = vector.extract_strided_slice %66 {offsets = [0, 32], sizes = [4, 16], strides = [1, 1]} : vector<4x64xf32> to vector<4x16xf32>
    %80 = math.tanh %79 : vector<4x16xf32>
    %81 = vector.extract_strided_slice %66 {offsets = [0, 48], sizes = [4, 16], strides = [1, 1]} : vector<4x64xf32> to vector<4x16xf32>
    %82 = arith.negf %81 : vector<4x16xf32>
    %83 = math.exp %82 : vector<4x16xf32>
    %cst_21 = arith.constant 1.000000e+00 : f32
    %84 = vector.broadcast %cst_21 : f32 to vector<4x16xf32>
    %85 = arith.addf %84, %83 : vector<4x16xf32>
    %86 = arith.divf %84, %85 : vector<4x16xf32>
    %87 = arith.mulf %78, %60 : vector<4x16xf32>
    %88 = arith.mulf %72, %80 : vector<4x16xf32>
    %89 = arith.addf %87, %88 : vector<4x16xf32>
    %90 = math.tanh %89 : vector<4x16xf32>
    %91 = arith.mulf %86, %90 : vector<4x16xf32>
    %c8 = arith.constant 8 : index
    %c0_22 = arith.constant 0 : index
    %92 = vector.load %arg16[%c8, %c0_22] : memref<16x16xf32, #tpu.memory_space<vmem>>, vector<4x16xf32>
    tpu.vector_store %arg16[%c8, %c0_22], %91 {strides = array<i32>} : memref<16x16xf32, #tpu.memory_space<vmem>>, vector<4x16xf32>,
    %93 = vector.extract_strided_slice %5 {offsets = [12, 0], sizes = [4, 64], strides = [1, 1]} : vector<16x64xf32> to vector<4x64xf32>
    %cst_23 = arith.constant dense<0.000000e+00> : vector<4x64xf32>
    %94 = tpu.matmul %91, %6, %cst_23 {dimension_numbers = #tpu.dot_dimension_numbers<[1], [0], [0], [1], [0, 0, 1, 1], [], []>} : vector<4x16xf32>, vector<16x64xf32>, vector<4x64xf32> -> vector<4x64xf32>
    %95 = arith.addf %93, %94 : vector<4x64xf32>
    %96 = vector.extract_strided_slice %95 {offsets = [0, 0], sizes = [4, 16], strides = [1, 1]} : vector<4x64xf32> to vector<4x16xf32>
    %97 = arith.negf %96 : vector<4x16xf32>
    %98 = math.exp %97 : vector<4x16xf32>
    %cst_24 = arith.constant 1.000000e+00 : f32
    %99 = vector.broadcast %cst_24 : f32 to vector<4x16xf32>
    %100 = arith.addf %99, %98 : vector<4x16xf32>
    %101 = arith.divf %99, %100 : vector<4x16xf32>
    %102 = vector.extract_strided_slice %95 {offsets = [0, 16], sizes = [4, 16], strides = [1, 1]} : vector<4x64xf32> to vector<4x16xf32>
    %103 = arith.negf %102 : vector<4x16xf32>
    %104 = math.exp %103 : vector<4x16xf32>
    %cst_25 = arith.constant 1.000000e+00 : f32
    %105 = vector.broadcast %cst_25 : f32 to vector<4x16xf32>
    %106 = arith.addf %105, %104 : vector<4x16xf32>
    %107 = arith.divf %105, %106 : vector<4x16xf32>
    %108 = vector.extract_strided_slice %95 {offsets = [0, 32], sizes = [4, 16], strides = [1, 1]} : vector<4x64xf32> to vector<4x16xf32>
    %109 = math.tanh %108 : vector<4x16xf32>
    %110 = vector.extract_strided_slice %95 {offsets = [0, 48], sizes = [4, 16], strides = [1, 1]} : vector<4x64xf32> to vector<4x16xf32>
    %111 = arith.negf %110 : vector<4x16xf32>
    %112 = math.exp %111 : vector<4x16xf32>
    %cst_26 = arith.constant 1.000000e+00 : f32
    %113 = vector.broadcast %cst_26 : f32 to vector<4x16xf32>
    %114 = arith.addf %113, %112 : vector<4x16xf32>
    %115 = arith.divf %113, %114 : vector<4x16xf32>
    %116 = arith.mulf %107, %89 : vector<4x16xf32>
    %117 = arith.mulf %101, %109 : vector<4x16xf32>
    %118 = arith.addf %116, %117 : vector<4x16xf32>
    %119 = math.tanh %118 : vector<4x16xf32>
    %120 = arith.mulf %115, %119 : vector<4x16xf32>
    %c12 = arith.constant 12 : index
    %c0_27 = arith.constant 0 : index
    %121 = vector.load %arg16[%c12, %c0_27] : memref<16x16xf32, #tpu.memory_space<vmem>>, vector<4x16xf32>
    tpu.vector_store %arg16[%c12, %c0_27], %120 {strides = array<i32>} : memref<16x16xf32, #tpu.memory_space<vmem>>, vector<4x16xf32>,
    %c0_28 = arith.constant 0 : index
    %c0_29 = arith.constant 0 : index
    %122 = vector.load %arg16[%c0_28, %c0_29] : memref<16x16xf32, #tpu.memory_space<vmem>>, vector<16x16xf32>
    %c0_30 = arith.constant 0 : index
    %c0_31 = arith.constant 0 : index
    %123 = vector.load %arg5[%c0_30, %c0_31] : memref<16x64xf32, #tpu.memory_space<vmem>>, vector<16x64xf32>
    %cst_32 = arith.constant dense<0.000000e+00> : vector<16x64xf32>
    %124 = tpu.matmul %122, %123, %cst_32 {dimension_numbers = #tpu.dot_dimension_numbers<[1], [0], [0], [1], [0, 0, 1, 1], [], []>} : vector<16x16xf32>, vector<16x64xf32>, vector<16x64xf32> -> vector<16x64xf32>
    %c0_33 = arith.constant 0 : index
    %c0_34 = arith.constant 0 : index
    %125 = vector.load %arg7[%c0_33, %c0_34] : memref<1x64xf32, #tpu.memory_space<vmem>>, vector<1x64xf32>
    %126 = vector.broadcast %125 : vector<1x64xf32> to vector<16x64xf32>
    %127 = arith.addf %124, %126 : vector<16x64xf32>
    %c0_35 = arith.constant 0 : index
    %c0_36 = arith.constant 0 : index
    %128 = vector.load %arg6[%c0_35, %c0_36] : memref<16x64xf32, #tpu.memory_space<vmem>>, vector<16x64xf32>
    %cst_37 = arith.constant 0.000000e+00 : f32
    %129 = vector.broadcast %cst_37 : f32 to vector<4x16xf32>
    %130 = vector.extract_strided_slice %127 {offsets = [0, 0], sizes = [4, 64], strides = [1, 1]} : vector<16x64xf32> to vector<4x64xf32>
    %131 = vector.extract_strided_slice %130 {offsets = [0, 0], sizes = [4, 16], strides = [1, 1]} : vector<4x64xf32> to vector<4x16xf32>
    %132 = arith.negf %131 : vector<4x16xf32>
    %133 = math.exp %132 : vector<4x16xf32>
    %cst_38 = arith.constant 1.000000e+00 : f32
    %134 = vector.broadcast %cst_38 : f32 to vector<4x16xf32>
    %135 = arith.addf %134, %133 : vector<4x16xf32>
    %136 = arith.divf %134, %135 : vector<4x16xf32>
    %137 = vector.extract_strided_slice %130 {offsets = [0, 16], sizes = [4, 16], strides = [1, 1]} : vector<4x64xf32> to vector<4x16xf32>
    %138 = arith.negf %137 : vector<4x16xf32>
    %139 = math.exp %138 : vector<4x16xf32>
    %cst_39 = arith.constant 1.000000e+00 : f32
    %140 = vector.broadcast %cst_39 : f32 to vector<4x16xf32>
    %141 = arith.addf %140, %139 : vector<4x16xf32>
    %142 = arith.divf %140, %141 : vector<4x16xf32>
    %143 = vector.extract_strided_slice %130 {offsets = [0, 32], sizes = [4, 16], strides = [1, 1]} : vector<4x64xf32> to vector<4x16xf32>
    %144 = math.tanh %143 : vector<4x16xf32>
    %145 = vector.extract_strided_slice %130 {offsets = [0, 48], sizes = [4, 16], strides = [1, 1]} : vector<4x64xf32> to vector<4x16xf32>
    %146 = arith.negf %145 : vector<4x16xf32>
    %147 = math.exp %146 : vector<4x16xf32>
    %cst_40 = arith.constant 1.000000e+00 : f32
    %148 = vector.broadcast %cst_40 : f32 to vector<4x16xf32>
    %149 = arith.addf %148, %147 : vector<4x16xf32>
    %150 = arith.divf %148, %149 : vector<4x16xf32>
    %151 = arith.mulf %142, %129 : vector<4x16xf32>
    %152 = arith.mulf %136, %144 : vector<4x16xf32>
    %153 = arith.addf %151, %152 : vector<4x16xf32>
    %154 = math.tanh %153 : vector<4x16xf32>
    %155 = arith.mulf %150, %154 : vector<4x16xf32>
    %c0_41 = arith.constant 0 : index
    %c0_42 = arith.constant 0 : index
    %156 = vector.load %arg16[%c0_41, %c0_42] : memref<16x16xf32, #tpu.memory_space<vmem>>, vector<4x16xf32>
    tpu.vector_store %arg16[%c0_41, %c0_42], %155 {strides = array<i32>} : memref<16x16xf32, #tpu.memory_space<vmem>>, vector<4x16xf32>,
    %157 = vector.extract_strided_slice %127 {offsets = [4, 0], sizes = [4, 64], strides = [1, 1]} : vector<16x64xf32> to vector<4x64xf32>
    %cst_43 = arith.constant dense<0.000000e+00> : vector<4x64xf32>
    %158 = tpu.matmul %155, %128, %cst_43 {dimension_numbers = #tpu.dot_dimension_numbers<[1], [0], [0], [1], [0, 0, 1, 1], [], []>} : vector<4x16xf32>, vector<16x64xf32>, vector<4x64xf32> -> vector<4x64xf32>
    %159 = arith.addf %157, %158 : vector<4x64xf32>
    %160 = vector.extract_strided_slice %159 {offsets = [0, 0], sizes = [4, 16], strides = [1, 1]} : vector<4x64xf32> to vector<4x16xf32>
    %161 = arith.negf %160 : vector<4x16xf32>
    %162 = math.exp %161 : vector<4x16xf32>
    %cst_44 = arith.constant 1.000000e+00 : f32
    %163 = vector.broadcast %cst_44 : f32 to vector<4x16xf32>
    %164 = arith.addf %163, %162 : vector<4x16xf32>
    %165 = arith.divf %163, %164 : vector<4x16xf32>
    %166 = vector.extract_strided_slice %159 {offsets = [0, 16], sizes = [4, 16], strides = [1, 1]} : vector<4x64xf32> to vector<4x16xf32>
    %167 = arith.negf %166 : vector<4x16xf32>
    %168 = math.exp %167 : vector<4x16xf32>
    %cst_45 = arith.constant 1.000000e+00 : f32
    %169 = vector.broadcast %cst_45 : f32 to vector<4x16xf32>
    %170 = arith.addf %169, %168 : vector<4x16xf32>
    %171 = arith.divf %169, %170 : vector<4x16xf32>
    %172 = vector.extract_strided_slice %159 {offsets = [0, 32], sizes = [4, 16], strides = [1, 1]} : vector<4x64xf32> to vector<4x16xf32>
    %173 = math.tanh %172 : vector<4x16xf32>
    %174 = vector.extract_strided_slice %159 {offsets = [0, 48], sizes = [4, 16], strides = [1, 1]} : vector<4x64xf32> to vector<4x16xf32>
    %175 = arith.negf %174 : vector<4x16xf32>
    %176 = math.exp %175 : vector<4x16xf32>
    %cst_46 = arith.constant 1.000000e+00 : f32
    %177 = vector.broadcast %cst_46 : f32 to vector<4x16xf32>
    %178 = arith.addf %177, %176 : vector<4x16xf32>
    %179 = arith.divf %177, %178 : vector<4x16xf32>
    %180 = arith.mulf %171, %153 : vector<4x16xf32>
    %181 = arith.mulf %165, %173 : vector<4x16xf32>
    %182 = arith.addf %180, %181 : vector<4x16xf32>
    %183 = math.tanh %182 : vector<4x16xf32>
    %184 = arith.mulf %179, %183 : vector<4x16xf32>
    %c4_47 = arith.constant 4 : index
    %c0_48 = arith.constant 0 : index
    %185 = vector.load %arg16[%c4_47, %c0_48] : memref<16x16xf32, #tpu.memory_space<vmem>>, vector<4x16xf32>
    tpu.vector_store %arg16[%c4_47, %c0_48], %184 {strides = array<i32>} : memref<16x16xf32, #tpu.memory_space<vmem>>, vector<4x16xf32>,
    %186 = vector.extract_strided_slice %127 {offsets = [8, 0], sizes = [4, 64], strides = [1, 1]} : vector<16x64xf32> to vector<4x64xf32>
    %cst_49 = arith.constant dense<0.000000e+00> : vector<4x64xf32>
    %187 = tpu.matmul %184, %128, %cst_49 {dimension_numbers = #tpu.dot_dimension_numbers<[1], [0], [0], [1], [0, 0, 1, 1], [], []>} : vector<4x16xf32>, vector<16x64xf32>, vector<4x64xf32> -> vector<4x64xf32>
    %188 = arith.addf %186, %187 : vector<4x64xf32>
    %189 = vector.extract_strided_slice %188 {offsets = [0, 0], sizes = [4, 16], strides = [1, 1]} : vector<4x64xf32> to vector<4x16xf32>
    %190 = arith.negf %189 : vector<4x16xf32>
    %191 = math.exp %190 : vector<4x16xf32>
    %cst_50 = arith.constant 1.000000e+00 : f32
    %192 = vector.broadcast %cst_50 : f32 to vector<4x16xf32>
    %193 = arith.addf %192, %191 : vector<4x16xf32>
    %194 = arith.divf %192, %193 : vector<4x16xf32>
    %195 = vector.extract_strided_slice %188 {offsets = [0, 16], sizes = [4, 16], strides = [1, 1]} : vector<4x64xf32> to vector<4x16xf32>
    %196 = arith.negf %195 : vector<4x16xf32>
    %197 = math.exp %196 : vector<4x16xf32>
    %cst_51 = arith.constant 1.000000e+00 : f32
    %198 = vector.broadcast %cst_51 : f32 to vector<4x16xf32>
    %199 = arith.addf %198, %197 : vector<4x16xf32>
    %200 = arith.divf %198, %199 : vector<4x16xf32>
    %201 = vector.extract_strided_slice %188 {offsets = [0, 32], sizes = [4, 16], strides = [1, 1]} : vector<4x64xf32> to vector<4x16xf32>
    %202 = math.tanh %201 : vector<4x16xf32>
    %203 = vector.extract_strided_slice %188 {offsets = [0, 48], sizes = [4, 16], strides = [1, 1]} : vector<4x64xf32> to vector<4x16xf32>
    %204 = arith.negf %203 : vector<4x16xf32>
    %205 = math.exp %204 : vector<4x16xf32>
    %cst_52 = arith.constant 1.000000e+00 : f32
    %206 = vector.broadcast %cst_52 : f32 to vector<4x16xf32>
    %207 = arith.addf %206, %205 : vector<4x16xf32>
    %208 = arith.divf %206, %207 : vector<4x16xf32>
    %209 = arith.mulf %200, %182 : vector<4x16xf32>
    %210 = arith.mulf %194, %202 : vector<4x16xf32>
    %211 = arith.addf %209, %210 : vector<4x16xf32>
    %212 = math.tanh %211 : vector<4x16xf32>
    %213 = arith.mulf %208, %212 : vector<4x16xf32>
    %c8_53 = arith.constant 8 : index
    %c0_54 = arith.constant 0 : index
    %214 = vector.load %arg16[%c8_53, %c0_54] : memref<16x16xf32, #tpu.memory_space<vmem>>, vector<4x16xf32>
    tpu.vector_store %arg16[%c8_53, %c0_54], %213 {strides = array<i32>} : memref<16x16xf32, #tpu.memory_space<vmem>>, vector<4x16xf32>,
    %215 = vector.extract_strided_slice %127 {offsets = [12, 0], sizes = [4, 64], strides = [1, 1]} : vector<16x64xf32> to vector<4x64xf32>
    %cst_55 = arith.constant dense<0.000000e+00> : vector<4x64xf32>
    %216 = tpu.matmul %213, %128, %cst_55 {dimension_numbers = #tpu.dot_dimension_numbers<[1], [0], [0], [1], [0, 0, 1, 1], [], []>} : vector<4x16xf32>, vector<16x64xf32>, vector<4x64xf32> -> vector<4x64xf32>
    %217 = arith.addf %215, %216 : vector<4x64xf32>
    %218 = vector.extract_strided_slice %217 {offsets = [0, 0], sizes = [4, 16], strides = [1, 1]} : vector<4x64xf32> to vector<4x16xf32>
    %219 = arith.negf %218 : vector<4x16xf32>
    %220 = math.exp %219 : vector<4x16xf32>
    %cst_56 = arith.constant 1.000000e+00 : f32
    %221 = vector.broadcast %cst_56 : f32 to vector<4x16xf32>
    %222 = arith.addf %221, %220 : vector<4x16xf32>
    %223 = arith.divf %221, %222 : vector<4x16xf32>
    %224 = vector.extract_strided_slice %217 {offsets = [0, 16], sizes = [4, 16], strides = [1, 1]} : vector<4x64xf32> to vector<4x16xf32>
    %225 = arith.negf %224 : vector<4x16xf32>
    %226 = math.exp %225 : vector<4x16xf32>
    %cst_57 = arith.constant 1.000000e+00 : f32
    %227 = vector.broadcast %cst_57 : f32 to vector<4x16xf32>
    %228 = arith.addf %227, %226 : vector<4x16xf32>
    %229 = arith.divf %227, %228 : vector<4x16xf32>
    %230 = vector.extract_strided_slice %217 {offsets = [0, 32], sizes = [4, 16], strides = [1, 1]} : vector<4x64xf32> to vector<4x16xf32>
    %231 = math.tanh %230 : vector<4x16xf32>
    %232 = vector.extract_strided_slice %217 {offsets = [0, 48], sizes = [4, 16], strides = [1, 1]} : vector<4x64xf32> to vector<4x16xf32>
    %233 = arith.negf %232 : vector<4x16xf32>
    %234 = math.exp %233 : vector<4x16xf32>
    %cst_58 = arith.constant 1.000000e+00 : f32
    %235 = vector.broadcast %cst_58 : f32 to vector<4x16xf32>
    %236 = arith.addf %235, %234 : vector<4x16xf32>
    %237 = arith.divf %235, %236 : vector<4x16xf32>
    %238 = arith.mulf %229, %211 : vector<4x16xf32>
    %239 = arith.mulf %223, %231 : vector<4x16xf32>
    %240 = arith.addf %238, %239 : vector<4x16xf32>
    %241 = math.tanh %240 : vector<4x16xf32>
    %242 = arith.mulf %237, %241 : vector<4x16xf32>
    %c12_59 = arith.constant 12 : index
    %c0_60 = arith.constant 0 : index
    %243 = vector.load %arg16[%c12_59, %c0_60] : memref<16x16xf32, #tpu.memory_space<vmem>>, vector<4x16xf32>
    tpu.vector_store %arg16[%c12_59, %c0_60], %242 {strides = array<i32>} : memref<16x16xf32, #tpu.memory_space<vmem>>, vector<4x16xf32>,
    %c0_61 = arith.constant 0 : index
    %c0_62 = arith.constant 0 : index
    %244 = vector.load %arg16[%c0_61, %c0_62] : memref<16x16xf32, #tpu.memory_space<vmem>>, vector<16x16xf32>
    %c0_63 = arith.constant 0 : index
    %c0_64 = arith.constant 0 : index
    %245 = vector.load %arg8[%c0_63, %c0_64] : memref<16x16xf32, #tpu.memory_space<vmem>>, vector<16x16xf32>
    %c0_65 = arith.constant 0 : index
    %c0_66 = arith.constant 0 : index
    %246 = vector.load %arg9[%c0_65, %c0_66] : memref<1x16xf32, #tpu.memory_space<vmem>>, vector<1x16xf32>
    %c0_67 = arith.constant 0 : index
    %c0_68 = arith.constant 0 : index
    %247 = vector.load %arg10[%c0_67, %c0_68] : memref<3x4xf32, #tpu.memory_space<vmem>>, vector<3x4xf32>
    %c0_69 = arith.constant 0 : index
    %c0_70 = arith.constant 0 : index
    %248 = vector.load %arg11[%c0_69, %c0_70] : memref<3x1xf32, #tpu.memory_space<vmem>>, vector<3x1xf32>
    %c0_71 = arith.constant 0 : index
    %c0_72 = arith.constant 0 : index
    %249 = vector.load %arg12[%c0_71, %c0_72] : memref<16x24xf32, #tpu.memory_space<vmem>>, vector<16x24xf32>
    %c0_73 = arith.constant 0 : index
    %c0_74 = arith.constant 0 : index
    %250 = vector.load %arg13[%c0_73, %c0_74] : memref<3x24xf32, #tpu.memory_space<vmem>>, vector<3x24xf32>
    %c0_75 = arith.constant 0 : index
    %c0_76 = arith.constant 0 : index
    %251 = vector.load %arg14[%c0_75, %c0_76] : memref<1x24xf32, #tpu.memory_space<vmem>>, vector<1x24xf32>
    %252 = vector.extract_strided_slice %244 {offsets = [0, 0], sizes = [4, 16], strides = [1, 1]} : vector<16x16xf32> to vector<4x16xf32>
    %cst_77 = arith.constant dense<0.000000e+00> : vector<4x16xf32>
    %253 = tpu.matmul %252, %245, %cst_77 {dimension_numbers = #tpu.dot_dimension_numbers<[1], [0], [0], [1], [0, 0, 1, 1], [], []>} : vector<4x16xf32>, vector<16x16xf32>, vector<4x16xf32> -> vector<4x16xf32>
    %254 = vector.broadcast %246 : vector<1x16xf32> to vector<4x16xf32>
    %255 = arith.addf %253, %254 : vector<4x16xf32>
    %cst_78 = arith.constant dense<0.000000e+00> : vector<3x16xf32>
    %256 = tpu.matmul %247, %255, %cst_78 {dimension_numbers = #tpu.dot_dimension_numbers<[1], [0], [0], [1], [0, 0, 1, 1], [], []>} : vector<3x4xf32>, vector<4x16xf32>, vector<3x16xf32> -> vector<3x16xf32>
    %257 = vector.broadcast %248 : vector<3x1xf32> to vector<3x16xf32>
    %258 = arith.addf %256, %257 : vector<3x16xf32>
    %cst_79 = arith.constant dense<0.000000e+00> : vector<3x24xf32>
    %259 = tpu.matmul %258, %249, %cst_79 {dimension_numbers = #tpu.dot_dimension_numbers<[1], [0], [0], [1], [0, 0, 1, 1], [], []>} : vector<3x16xf32>, vector<16x24xf32>, vector<3x24xf32> -> vector<3x24xf32>
    %260 = arith.mulf %259, %250 : vector<3x24xf32>
    %cst_80 = arith.constant dense<0.000000e+00> : vector<24xf32>
    %261 = vector.multi_reduction <add>, %260, %cst_80 [0] : vector<3x24xf32> to vector<24xf32>
    %262 = vector.shape_cast %261 : vector<24xf32> to vector<1x24xf32>
    %263 = arith.addf %262, %251 : vector<1x24xf32>
    %c0_81 = arith.constant 0 : index
    %c0_82 = arith.constant 0 : index
    %264 = vector.load %arg15[%c0_81, %c0_82] : memref<4x24xf32, #tpu.memory_space<vmem>>, vector<1x24xf32>
    tpu.vector_store %arg15[%c0_81, %c0_82], %263 {strides = array<i32>} : memref<4x24xf32, #tpu.memory_space<vmem>>, vector<1x24xf32>,
    %265 = vector.extract_strided_slice %244 {offsets = [4, 0], sizes = [4, 16], strides = [1, 1]} : vector<16x16xf32> to vector<4x16xf32>
    %cst_83 = arith.constant dense<0.000000e+00> : vector<4x16xf32>
    %266 = tpu.matmul %265, %245, %cst_83 {dimension_numbers = #tpu.dot_dimension_numbers<[1], [0], [0], [1], [0, 0, 1, 1], [], []>} : vector<4x16xf32>, vector<16x16xf32>, vector<4x16xf32> -> vector<4x16xf32>
    %267 = vector.broadcast %246 : vector<1x16xf32> to vector<4x16xf32>
    %268 = arith.addf %266, %267 : vector<4x16xf32>
    %cst_84 = arith.constant dense<0.000000e+00> : vector<3x16xf32>
    %269 = tpu.matmul %247, %268, %cst_84 {dimension_numbers = #tpu.dot_dimension_numbers<[1], [0], [0], [1], [0, 0, 1, 1], [], []>} : vector<3x4xf32>, vector<4x16xf32>, vector<3x16xf32> -> vector<3x16xf32>
    %270 = vector.broadcast %248 : vector<3x1xf32> to vector<3x16xf32>
    %271 = arith.addf %269, %270 : vector<3x16xf32>
    %cst_85 = arith.constant dense<0.000000e+00> : vector<3x24xf32>
    %272 = tpu.matmul %271, %249, %cst_85 {dimension_numbers = #tpu.dot_dimension_numbers<[1], [0], [0], [1], [0, 0, 1, 1], [], []>} : vector<3x16xf32>, vector<16x24xf32>, vector<3x24xf32> -> vector<3x24xf32>
    %273 = arith.mulf %272, %250 : vector<3x24xf32>
    %cst_86 = arith.constant dense<0.000000e+00> : vector<24xf32>
    %274 = vector.multi_reduction <add>, %273, %cst_86 [0] : vector<3x24xf32> to vector<24xf32>
    %275 = vector.shape_cast %274 : vector<24xf32> to vector<1x24xf32>
    %276 = arith.addf %275, %251 : vector<1x24xf32>
    %c1 = arith.constant 1 : index
    %c0_87 = arith.constant 0 : index
    %277 = vector.load %arg15[%c1, %c0_87] : memref<4x24xf32, #tpu.memory_space<vmem>>, vector<1x24xf32>
    tpu.vector_store %arg15[%c1, %c0_87], %276 {strides = array<i32>} : memref<4x24xf32, #tpu.memory_space<vmem>>, vector<1x24xf32>,
    %278 = vector.extract_strided_slice %244 {offsets = [8, 0], sizes = [4, 16], strides = [1, 1]} : vector<16x16xf32> to vector<4x16xf32>
    %cst_88 = arith.constant dense<0.000000e+00> : vector<4x16xf32>
    %279 = tpu.matmul %278, %245, %cst_88 {dimension_numbers = #tpu.dot_dimension_numbers<[1], [0], [0], [1], [0, 0, 1, 1], [], []>} : vector<4x16xf32>, vector<16x16xf32>, vector<4x16xf32> -> vector<4x16xf32>
    %280 = vector.broadcast %246 : vector<1x16xf32> to vector<4x16xf32>
    %281 = arith.addf %279, %280 : vector<4x16xf32>
    %cst_89 = arith.constant dense<0.000000e+00> : vector<3x16xf32>
    %282 = tpu.matmul %247, %281, %cst_89 {dimension_numbers = #tpu.dot_dimension_numbers<[1], [0], [0], [1], [0, 0, 1, 1], [], []>} : vector<3x4xf32>, vector<4x16xf32>, vector<3x16xf32> -> vector<3x16xf32>
    %283 = vector.broadcast %248 : vector<3x1xf32> to vector<3x16xf32>
    %284 = arith.addf %282, %283 : vector<3x16xf32>
    %cst_90 = arith.constant dense<0.000000e+00> : vector<3x24xf32>
    %285 = tpu.matmul %284, %249, %cst_90 {dimension_numbers = #tpu.dot_dimension_numbers<[1], [0], [0], [1], [0, 0, 1, 1], [], []>} : vector<3x16xf32>, vector<16x24xf32>, vector<3x24xf32> -> vector<3x24xf32>
    %286 = arith.mulf %285, %250 : vector<3x24xf32>
    %cst_91 = arith.constant dense<0.000000e+00> : vector<24xf32>
    %287 = vector.multi_reduction <add>, %286, %cst_91 [0] : vector<3x24xf32> to vector<24xf32>
    %288 = vector.shape_cast %287 : vector<24xf32> to vector<1x24xf32>
    %289 = arith.addf %288, %251 : vector<1x24xf32>
    %c2 = arith.constant 2 : index
    %c0_92 = arith.constant 0 : index
    %290 = vector.load %arg15[%c2, %c0_92] : memref<4x24xf32, #tpu.memory_space<vmem>>, vector<1x24xf32>
    tpu.vector_store %arg15[%c2, %c0_92], %289 {strides = array<i32>} : memref<4x24xf32, #tpu.memory_space<vmem>>, vector<1x24xf32>,
    %291 = vector.extract_strided_slice %244 {offsets = [12, 0], sizes = [4, 16], strides = [1, 1]} : vector<16x16xf32> to vector<4x16xf32>
    %cst_93 = arith.constant dense<0.000000e+00> : vector<4x16xf32>
    %292 = tpu.matmul %291, %245, %cst_93 {dimension_numbers = #tpu.dot_dimension_numbers<[1], [0], [0], [1], [0, 0, 1, 1], [], []>} : vector<4x16xf32>, vector<16x16xf32>, vector<4x16xf32> -> vector<4x16xf32>
    %293 = vector.broadcast %246 : vector<1x16xf32> to vector<4x16xf32>
    %294 = arith.addf %292, %293 : vector<4x16xf32>
    %cst_94 = arith.constant dense<0.000000e+00> : vector<3x16xf32>
    %295 = tpu.matmul %247, %294, %cst_94 {dimension_numbers = #tpu.dot_dimension_numbers<[1], [0], [0], [1], [0, 0, 1, 1], [], []>} : vector<3x4xf32>, vector<4x16xf32>, vector<3x16xf32> -> vector<3x16xf32>
    %296 = vector.broadcast %248 : vector<3x1xf32> to vector<3x16xf32>
    %297 = arith.addf %295, %296 : vector<3x16xf32>
    %cst_95 = arith.constant dense<0.000000e+00> : vector<3x24xf32>
    %298 = tpu.matmul %297, %249, %cst_95 {dimension_numbers = #tpu.dot_dimension_numbers<[1], [0], [0], [1], [0, 0, 1, 1], [], []>} : vector<3x16xf32>, vector<16x24xf32>, vector<3x24xf32> -> vector<3x24xf32>
    %299 = arith.mulf %298, %250 : vector<3x24xf32>
    %cst_96 = arith.constant dense<0.000000e+00> : vector<24xf32>
    %300 = vector.multi_reduction <add>, %299, %cst_96 [0] : vector<3x24xf32> to vector<24xf32>
    %301 = vector.shape_cast %300 : vector<24xf32> to vector<1x24xf32>
    %302 = arith.addf %301, %251 : vector<1x24xf32>
    %c3 = arith.constant 3 : index
    %c0_97 = arith.constant 0 : index
    %303 = vector.load %arg15[%c3, %c0_97] : memref<4x24xf32, #tpu.memory_space<vmem>>, vector<1x24xf32>
    tpu.vector_store %arg15[%c3, %c0_97], %302 {strides = array<i32>} : memref<4x24xf32, #tpu.memory_space<vmem>>, vector<1x24xf32>,
    return
  }
  func.func @transform_0(%arg0: i32) -> (i32, i32) {
    %c0_i32 = arith.constant 0 : i32
    %c0_i32_0 = arith.constant 0 : i32
    %c0_i32_1 = arith.constant 0 : i32
    return %c0_i32, %c0_i32_0 : i32, i32
  }
  func.func @transform_1(%arg0: i32) -> (i32, i32) {
    %c0_i32 = arith.constant 0 : i32
    %c0_i32_0 = arith.constant 0 : i32
    %c0_i32_1 = arith.constant 0 : i32
    return %c0_i32, %c0_i32_0 : i32, i32
  }
  func.func @transform_2(%arg0: i32) -> (i32, i32) {
    %c0_i32 = arith.constant 0 : i32
    %c0_i32_0 = arith.constant 0 : i32
    %c0_i32_1 = arith.constant 0 : i32
    return %c0_i32, %c0_i32_0 : i32, i32
  }
  func.func @transform_3(%arg0: i32) -> (i32, i32) {
    %c0_i32 = arith.constant 0 : i32
    %c0_i32_0 = arith.constant 0 : i32
    %c0_i32_1 = arith.constant 0 : i32
    return %c0_i32, %c0_i32_0 : i32, i32
  }
  func.func @transform_4(%arg0: i32) -> (i32, i32) {
    %c0_i32 = arith.constant 0 : i32
    %c0_i32_0 = arith.constant 0 : i32
    %c0_i32_1 = arith.constant 0 : i32
    return %c0_i32, %c0_i32_0 : i32, i32
  }
  func.func @transform_5(%arg0: i32) -> (i32, i32) {
    %c0_i32 = arith.constant 0 : i32
    %c0_i32_0 = arith.constant 0 : i32
    %c0_i32_1 = arith.constant 0 : i32
    return %c0_i32, %c0_i32_0 : i32, i32
  }
  func.func @transform_6(%arg0: i32) -> (i32, i32) {
    %c0_i32 = arith.constant 0 : i32
    %c0_i32_0 = arith.constant 0 : i32
    %c0_i32_1 = arith.constant 0 : i32
    return %c0_i32, %c0_i32_0 : i32, i32
  }
  func.func @transform_7(%arg0: i32) -> (i32, i32) {
    %c0_i32 = arith.constant 0 : i32
    %c0_i32_0 = arith.constant 0 : i32
    %c0_i32_1 = arith.constant 0 : i32
    return %c0_i32, %c0_i32_0 : i32, i32
  }
  func.func @transform_8(%arg0: i32) -> (i32, i32) {
    %c0_i32 = arith.constant 0 : i32
    %c0_i32_0 = arith.constant 0 : i32
    %c0_i32_1 = arith.constant 0 : i32
    return %c0_i32, %c0_i32_0 : i32, i32
  }
  func.func @transform_9(%arg0: i32) -> (i32, i32) {
    %c0_i32 = arith.constant 0 : i32
    %c0_i32_0 = arith.constant 0 : i32
    %c0_i32_1 = arith.constant 0 : i32
    return %c0_i32, %c0_i32_0 : i32, i32
  }
  func.func @transform_10(%arg0: i32) -> (i32, i32) {
    %c0_i32 = arith.constant 0 : i32
    %c0_i32_0 = arith.constant 0 : i32
    %c0_i32_1 = arith.constant 0 : i32
    return %c0_i32, %c0_i32_0 : i32, i32
  }
  func.func @transform_11(%arg0: i32) -> (i32, i32) {
    %c0_i32 = arith.constant 0 : i32
    %c0_i32_0 = arith.constant 0 : i32
    %c0_i32_1 = arith.constant 0 : i32
    return %c0_i32, %c0_i32_0 : i32, i32
  }
  func.func @transform_12(%arg0: i32) -> (i32, i32) {
    %c0_i32 = arith.constant 0 : i32
    %c0_i32_0 = arith.constant 0 : i32
    %c0_i32_1 = arith.constant 0 : i32
    return %c0_i32, %c0_i32_0 : i32, i32
  }
  func.func @transform_13(%arg0: i32) -> (i32, i32) {
    %c0_i32 = arith.constant 0 : i32
    %c0_i32_0 = arith.constant 0 : i32
    %c0_i32_1 = arith.constant 0 : i32
    return %c0_i32, %c0_i32_0 : i32, i32
  }
  func.func @transform_14(%arg0: i32) -> (i32, i32) {
    %c0_i32 = arith.constant 0 : i32
    %c0_i32_0 = arith.constant 0 : i32
    %c0_i32_1 = arith.constant 0 : i32
    return %c0_i32, %c0_i32_0 : i32, i32
  }
}

</mosaic_0001>

<bundles_post_ra>
// kernel: model_forward.1
= control target key start
LH: loop header
LB: loop body
LE: loop exit
PB: predicated region body
PF: predicated region fallthrough
CT: control target
= control target key end

     0   :  { %vm58_vm0 = vcmask 130048   ;;  %v2246_v20 = vmov 0.0|0.0   ;;  %vm2247_vm1 = vmmov 0   ;;  %v2248_v24 = vmov 0.0   ;;  %s2249_s26 = smov 32   ;;  %s2586_s1 = inlined_call_operand.vmem [shape: f32[16,64], index: 1, kind: input, shape index: {}]   ;;  %s2587_s0 = inlined_call_operand.vmem [shape: f32[16,16], index: 0, kind: input, shape index: {}]   ;;  %s2588_s3 = inlined_call_operand.vmem [shape: f32[1,64], index: 3, kind: input, shape index: {}]   ;;  %s2589_s2 = inlined_call_operand.vmem [shape: f32[16,64], index: 2, kind: input, shape index: {}]   ;;  %s2590_s4 = inlined_call_operand.vmem [shape: f32[16,64], index: 4, kind: input, shape index: {}]   ;;  %s2591_s6 = inlined_call_operand.vmem [shape: f32[1,64], index: 6, kind: input, shape index: {}]   ;;  %s2592_s5 = inlined_call_operand.vmem [shape: f32[16,64], index: 5, kind: input, shape index: {}]   ;;  %s2593_s7 = inlined_call_operand.vmem [shape: f32[16,16], index: 7, kind: input, shape index: {}]   ;;  %s2594_s8 = inlined_call_operand.vmem [shape: f32[1,16], index: 8, kind: input, shape index: {}]   ;;  %s2595_s9 = inlined_call_operand.vmem [shape: f32[3,4], index: 9, kind: input, shape index: {}]   ;;  %s2596_s10 = inlined_call_operand.vmem [shape: f32[3,1], index: 10, kind: input, shape index: {}]   ;;  %s2597_s11 = inlined_call_operand.vmem [shape: f32[16,24], index: 11, kind: input, shape index: {}]   ;;  %s2598_s12 = inlined_call_operand.vmem [shape: f32[3,24], index: 12, kind: input, shape index: {}]   ;;  %s2599_s13 = inlined_call_operand.vmem [shape: f32[1,24], index: 13, kind: input, shape index: {}]   ;;  %s2600_s14 = inlined_call_operand.vmem [shape: f32[4,24], index: 14, kind: output, shape index: {}]  }
   0x1   :  { %v49_v0 = vld [vmem:[%s2586_s1] sm:$0xff]  ;;  %v50_v1 = vld [vmem:[%s2586_s1 + $0x8] sm:$0xff]  ;;  %s2244_s1 = smov 96   ;;  %2124 = vmatprep.subr.bf16.mxu1 %v2246_v20  ;;  %1999 = vmatprep.mubr.msk.f32.mxu1 %vm2247_vm1, %v2248_v24  ;;  %vm170_vm2 = vcmask 125952   ;;  %vm279_vm3 = vcmask 130052   ;;  %vm1043_vm4 = vcmask 1043456  }
   0x2   :  { %v47_v2 = vld [vmem:[%s2587_s0] sm:$0xff]  ;;  %v2120_v3 = vpack.c.bf16 %v50_v1, %v49_v0  ;;  %v48_v4 = vld [vmem:[%s2587_s0 + $0x8] sm:$0xff]  ;;  %s2245_s0 = smov 16   ;;  %vm1039_vm5 = vcmask 31744   ;;  %vm1191_vm6 = vcmask 190464   ;;  %vm1200_vm7 = vcmask 188416  }
   0x3   :  { %1992 = vmatprep.mubr.msk.f32.mxu0 %vm58_vm0, %v47_v2  ;;  %v1893_v5 = vld [vmem:[%s2588_s3] ss:$0 sm:$0xff]  ;;  %v141_v22 = vld [vmem:[%s2589_s2 + $0x8] sm:$0xff] }
   0x4   :  { %2121 = vmatprep.subr.bf16.mxu0 %v2120_v3  ;;  %v140_v21 = vld [vmem:[%s2589_s2] sm:$0xff]  ;;  %s2250_s2 = smov 80  }
   0x5   :  { %2123 = vmatpush3.bf16.msra.mxu0 %v2120_v3  ;;  %v2125_v23 = vpack.c.bf16 %v141_v22, %v140_v21  ;;  %v499_v22 = vld [vmem:[%s2590_s4] sm:$0xff] }
   0x6   :  { %2127 = vmatprep.subr.bf16.mxu0 %v2246_v20 }
   0x7   :  { %2126 = vmatpush3.bf16.msra.mxu1 %v2125_v23 }
   0x8   :  { %1993 = vmatmul.mubr.msk.f32.vlgmr.msra.gmra.mrb[0].mxu0 %vm58_vm0, %v48_v4  ;;  %2130 = vmatprep.subr.bf16.mxu1 %v2246_v20 }
   0x9   :  { %2006 = vmatprep.mubr.msk.f32.mxu0 %vm2247_vm1, %v2248_v24  ;;  %2129 = vmatpush3.bf16.msra.mxu0 %v2125_v23 }
  0xdb   :  { %v1994_v6 = vpop.f32.mrb[0].mxu0 }
  0xdc   :  { %v2344_v7 = vadd.f32 %v1994_v6, %v1893_v5  ;;  %v131_v8 = vpop.f32.mrb[1].mxu0 }
  0xdd   :  { %v132_v9 = vadd.f32 %v1893_v5, %v131_v8 }
  0xdf   :  { %2180 = vtanh.f32 %v132_v9  ;;  %v1896_v11 = vmul.f32 -1.442695, %v132_v9 }
  0xe1   :  { %2182 = vpow2.f32 %v1896_v11 }
  0xe9   :  { %v2181_v10 = vpop.eup %2180 }
  0xea   :  { %151 = vrot.lane.b32.xlu0 %v2181_v10, %s2244_s1 }
  0xeb   :  { %v2183_v12 = vpop.eup %2182 }
  0xec   :  { %v145_v13 = vadd.f32 1.0, %v2183_v12 }
  0xee   :  { %2184 = vrcp.f32 %v145_v13 }
  0xf8   :  { %v2185_v14 = vpop.eup %2184 }
  0xf9   :  { %v149_v17 = vmul.f32 0.0, %v2185_v14 }
 0x15c   :  { %v152_v15 = vpop.permute.xlu0 %151 }
 0x15d   :  { %v154_v16 = vmul.f32 %v2185_v14, %v152_v15 }
 0x15f   :  { %156 = vrot.lane.b32.xlu0 %v154_v16, %s2245_s0 }
 0x1d1   :  { %v157_v18 = vpop.permute.xlu0 %156 }
 0x1d2   :  { %v159_v19 = vadd.f32 %v157_v18, %v149_v17 }
 0x1d4   :  { %2186 = vtanh.f32 %v159_v19  ;;  %v256_v40 = vrot.slane %v159_v19, 4 }
 0x1de   :  { %v2187_v25 = vpop.eup %2186 }
 0x1df   :  { %162 = vrot.lane.b32.xlu1 %v2187_v25, %s2249_s26 }
 0x251   :  { %v163_v26 = vpop.permute.xlu1 %162 }
 0x252   :  { %v165_v27 = vmul.f32 %v2185_v14, %v163_v26 }
 0x254   :  { %167 = vrot.lane.b32.xlu1 %v165_v27, %s2250_s2 }
 0x2c6   :  { %v168_v28 = vpop.permute.xlu1 %167 }
 0x2c7   :  { %171 = vst.msk [vmem:[#allocation2] sm:$0xf] %vm170_vm2, %v168_v28  ;;  %2000 = vmatmul.mubr.msk.f32.vlgmr.msra.gmra.mrb[0].mxu1 %vm58_vm0, %v168_v28 }
 0x2c8   :  { %2132 = vmatpush3.bf16.msra.mxu1 %v2125_v23  ;;  %2013 = vmatprep.mubr.msk.f32.mxu1 %vm2247_vm1, %v2248_v24  ;;  %v500_v23 = vld [vmem:[%s2590_s4 + $0x8] sm:$0xff] }
 0x2c9   :  { %2137 = vmatprep.subr.bf16.mxu1 %v2246_v20  ;;  %v2133_v25 = vpack.c.bf16 %v500_v23, %v499_v22  ;;  %v946_v23 = vld [vmem:[%s2593_s7] sm:$0xff] }
 0x2cb   :  { %2134 = vmatprep.subr.bf16.mxu0 %v2133_v25 }
 0x39a   :  { %v240_v29 = vpop.f32.mrb[0].mxu1 }
 0x39b   :  { %v245_v30 = vrot.slane %v240_v29, 4  ;;  %v2001_v31 = vpop.f32.mrb[1].mxu1 }
 0x39d   :  { %v247_v32 = vadd.f32 %v245_v30, %v132_v9  ;;  %v1903_v30 = vld [vmem:[%s2591_s6] ss:$0 sm:$0xff] }
 0x39f   :  { %2188 = vtanh.f32 %v247_v32  ;;  %v1898_v34 = vmul.f32 -1.442695, %v247_v32 }
 0x3a1   :  { %2190 = vpow2.f32 %v1898_v34 }
 0x3a9   :  { %v2189_v33 = vpop.eup %2188 }
 0x3aa   :  { %260 = vrot.lane.b32.xlu0 %v2189_v33, %s2244_s1 }
 0x3ab   :  { %v2191_v35 = vpop.eup %2190 }
 0x3ac   :  { %v251_v36 = vadd.f32 1.0, %v2191_v35 }
 0x3ae   :  { %2192 = vrcp.f32 %v251_v36 }
 0x3b8   :  { %v2193_v37 = vpop.eup %2192 }
 0x3b9   :  { %v258_v41 = vmul.f32 %v2193_v37, %v256_v40 }
 0x41c   :  { %v261_v38 = vpop.permute.xlu0 %260 }
 0x41d   :  { %v263_v39 = vmul.f32 %v2193_v37, %v261_v38 }
 0x41f   :  { %265 = vrot.lane.b32.xlu1 %v263_v39, %s2245_s0 }
 0x491   :  { %v266_v42 = vpop.permute.xlu1 %265 }
 0x492   :  { %v268_v43 = vadd.f32 %v266_v42, %v258_v41 }
 0x494   :  { %2194 = vtanh.f32 %v268_v43  ;;  %v365_v59 = vrot.slane %v268_v43, 4 }
 0x49e   :  { %v2195_v44 = vpop.eup %2194 }
 0x49f   :  { %271 = vrot.lane.b32.xlu0 %v2195_v44, %s2249_s26 }
 0x511   :  { %v272_v45 = vpop.permute.xlu0 %271 }
 0x512   :  { %v274_v46 = vmul.f32 %v2193_v37, %v272_v45  ;;  %v589_v45 = vld [vmem:[%s2592_s5] sm:$0xff] }
 0x514   :  { %v281_v47 = vrot.slane %v274_v46, 4 }
 0x516   :  { %282 = vrot.lane.b32.xlu1 %v281_v47, %s2250_s2 }
 0x588   :  { %v283_v48 = vpop.permute.xlu1 %282 }
 0x589   :  { %2007 = vmatmul.mubr.msk.f32.vlgmr.msra.gmra.mrb[2].mxu0 %vm58_vm0, %v283_v48 }
 0x58a   :  { %2136 = vmatpush3.bf16.msra.mxu0 %v2133_v25  ;;  %v947_v25 = vld [vmem:[%s2593_s7 + $0x8] sm:$0xff] }
 0x58b   :  { %2140 = vmatprep.subr.bf16.mxu0 %v2246_v20 }
 0x65c   :  { %v352_v49 = vpop.f32.mrb[2].mxu0 }
 0x65d   :  { %v356_v50 = vadd.f32 %v352_v49, %v2344_v7  ;;  %v2008_v51 = vpop.f32.mrb[3].mxu0 }
 0x65f   :  { %2196 = vtanh.f32 %v356_v50  ;;  %v1900_v53 = vmul.f32 -1.442695, %v356_v50 }
 0x661   :  { %2198 = vpow2.f32 %v1900_v53 }
 0x669   :  { %v2197_v52 = vpop.eup %2196 }
 0x66a   :  { %369 = vrot.lane.b32.xlu0 %v2197_v52, %s2244_s1 }
 0x66b   :  { %v2199_v54 = vpop.eup %2198 }
 0x66c   :  { %v360_v55 = vadd.f32 1.0, %v2199_v54 }
 0x66e   :  { %2200 = vrcp.f32 %v360_v55 }
 0x678   :  { %v2201_v56 = vpop.eup %2200 }
 0x679   :  { %v367_v60 = vmul.f32 %v2201_v56, %v365_v59 }
 0x6dc   :  { %v370_v57 = vpop.permute.xlu0 %369 }
 0x6dd   :  { %v372_v58 = vmul.f32 %v2201_v56, %v370_v57 }
 0x6df   :  { %374 = vrot.lane.b32.xlu1 %v372_v58, %s2245_s0 }
 0x751   :  { %v375_v61 = vpop.permute.xlu1 %374 }
 0x752   :  { %v377_v62 = vadd.f32 %v375_v61, %v367_v60 }
 0x754   :  { %2202 = vtanh.f32 %v377_v62  ;;  %v473_v15 = vrot.slane %v377_v62, 4 }
 0x75e   :  { %v2203_v63 = vpop.eup %2202 }
 0x75f   :  { %380 = vrot.lane.b32.xlu0 %v2203_v63, %s2249_s26 }
 0x7d1   :  { %v381_v0 = vpop.permute.xlu0 %380 }
 0x7d2   :  { %v383_v1 = vmul.f32 %v2201_v56, %v381_v0 }
 0x7d4   :  { %385 = vrot.lane.b32.xlu1 %v383_v1, %s2250_s2 }
 0x846   :  { %v386_v2 = vpop.permute.xlu1 %385 }
 0x847   :  { %388 = vst.msk [vmem:[#allocation2 + $0x8] sm:$0xf] %vm170_vm2, %v386_v2  ;;  %2014 = vmatmul.mubr.msk.f32.vlgmr.msra.gmra.mrb[2].mxu1 %vm58_vm0, %v386_v2 }
 0x848   :  { %2027 = vmatprep.mubr.msk.f32.mxu1 %vm2247_vm1, %v2248_v24 }
 0x91a   :  { %v457_v3 = vpop.f32.mrb[2].mxu1 }
 0x91b   :  { %v462_v4 = vrot.slane %v457_v3, 4  ;;  %v2015_v5 = vpop.f32.mrb[3].mxu1 }
 0x91d   :  { %v464_v6 = vadd.f32 %v462_v4, %v2344_v7 }
 0x91f   :  { %2204 = vtanh.f32 %v464_v6  ;;  %v1902_v9 = vmul.f32 -1.442695, %v464_v6 }
 0x921   :  { %2206 = vpow2.f32 %v1902_v9 }
 0x929   :  { %v2205_v8 = vpop.eup %2204 }
 0x92a   :  { %477 = vrot.lane.b32.xlu0 %v2205_v8, %s2244_s1 }
 0x92b   :  { %v2207_v10 = vpop.eup %2206 }
 0x92c   :  { %v468_v11 = vadd.f32 1.0, %v2207_v10 }
 0x92e   :  { %2208 = vrcp.f32 %v468_v11 }
 0x938   :  { %v2209_v12 = vpop.eup %2208 }
 0x939   :  { %v475_v16 = vmul.f32 %v2209_v12, %v473_v15 }
 0x99c   :  { %v478_v13 = vpop.permute.xlu0 %477 }
 0x99d   :  { %v480_v14 = vmul.f32 %v2209_v12, %v478_v13 }
 0x99f   :  { %482 = vrot.lane.b32.xlu1 %v480_v14, %s2245_s0 }
 0x9a3   :  { %276 = vrot.lane.b32.xlu1 %v274_v46, %s2250_s2  ;;  %v590_v46 = vld [vmem:[%s2592_s5 + $0x8] sm:$0xff] }
 0x9a4   :  { %v2138_v47 = vpack.c.bf16 %v590_v46, %v589_v45 }
 0x9a6   :  { %2139 = vmatpush3.bf16.msra.mxu1 %v2138_v47 }
 0x9a7   :  { %2143 = vmatprep.subr.bf16.mxu1 %v2246_v20 }
 0xa11   :  { %v483_v17 = vpop.permute.xlu1 %482 }
 0xa12   :  { %v485_v7 = vadd.f32 %v483_v17, %v475_v16 }
 0xa14   :  { %2210 = vtanh.f32 %v485_v7 }
 0xa15   :  { %v277_v18 = vpop.permute.xlu1 %276 }
 0xa16   :  { %280 = vst.msk [vmem:[#allocation2] sm:$0xf0] %vm279_vm3, %v277_v18 }
 0xa1d   :  { %v497_v19 = vld [vmem:[#allocation2] sm:$0xff] }
 0xa1e   :  { %v2211_v21 = vpop.eup %2210  ;;  %2020 = vmatprep.mubr.msk.f32.mxu0 %vm58_vm0, %v497_v19 }
 0xa1f   :  { %488 = vrot.lane.b32.xlu0 %v2211_v21, %s2249_s26 }
 0xa91   :  { %v489_v26 = vpop.permute.xlu0 %488 }
 0xa92   :  { %v491_v27 = vmul.f32 %v2209_v12, %v489_v26  ;;  %v2442_v26 = vpack.c.bf16 %v947_v25, %v946_v23 }
 0xa94   :  { %493 = vrot.lane.b32.xlu0 %v491_v27, %s2250_s2 }
 0xb06   :  { %v494_v28 = vpop.permute.xlu0 %493 }
 0xb07   :  { %496 = vst.msk [vmem:[#allocation2 + $0x8] sm:$0xf0] %vm279_vm3, %v494_v28 }
 0xb0e   :  { %v498_v29 = vld [vmem:[#allocation2 + $0x8] sm:$0xff] }
 0xb0f   :  { %2021 = vmatmul.mubr.msk.f32.vlgmr.msra.gmra.mrb[4].mxu0 %vm58_vm0, %v498_v29 }
 0xb10   :  { %2034 = vmatprep.mubr.msk.f32.mxu0 %vm2247_vm1, %v2248_v24  ;;  %2142 = vmatpush3.bf16.msra.mxu0 %v2138_v47 }
 0xb11   :  { %2146 = vmatprep.subr.bf16.mxu0 %v2246_v20 }
 0xbe2   :  { %v2022_v31 = vpop.f32.mrb[4].mxu0 }
 0xbe3   :  { %v2404_v32 = vadd.f32 %v2022_v31, %v1903_v30  ;;  %v580_v33 = vpop.f32.mrb[5].mxu0 }
 0xbe4   :  { %v581_v34 = vadd.f32 %v1903_v30, %v580_v33 }
 0xbe6   :  { %2212 = vtanh.f32 %v581_v34  ;;  %v1906_v36 = vmul.f32 -1.442695, %v581_v34 }
 0xbe8   :  { %2214 = vpow2.f32 %v1906_v36 }
 0xbf0   :  { %v2213_v35 = vpop.eup %2212 }
 0xbf1   :  { %600 = vrot.lane.b32.xlu1 %v2213_v35, %s2244_s1 }
 0xbf2   :  { %v2215_v37 = vpop.eup %2214 }
 0xbf3   :  { %v594_v38 = vadd.f32 1.0, %v2215_v37 }
 0xbf5   :  { %2216 = vrcp.f32 %v594_v38  ;;  %v2466_v38 = vld [vmem:[%s2595_s9] sm:$0x7] }
 0xbff   :  { %v2217_v39 = vpop.eup %2216 }
 0xc00   :  { %v598_v42 = vmul.f32 0.0, %v2217_v39 }
 0xc63   :  { %v601_v40 = vpop.permute.xlu1 %600 }
 0xc64   :  { %v603_v41 = vmul.f32 %v2217_v39, %v601_v40 }
 0xc66   :  { %605 = vrot.lane.b32.xlu0 %v603_v41, %s2245_s0 }
 0xcd8   :  { %v606_v43 = vpop.permute.xlu0 %605 }
 0xcd9   :  { %v608_v44 = vadd.f32 %v606_v43, %v598_v42 }
 0xcdb   :  { %2218 = vtanh.f32 %v608_v44  ;;  %v704_v63 = vrot.slane %v608_v44, 4  ;;  %v2251_v44 = vmov 0  }
 0xcdc   :  { %2178 = vset.pattern.permute.xlu1 %v2251_v44  ;;  %2179 = vset.pattern.permute.xlu0 %v2251_v44 }
 0xce5   :  { %v2219_v48 = vpop.eup %2218 }
 0xce6   :  { %611 = vrot.lane.b32.xlu1 %v2219_v48, %s2249_s26 }
 0xd58   :  { %v612_v49 = vpop.permute.xlu1 %611 }
 0xd59   :  { %v614_v50 = vmul.f32 %v2217_v39, %v612_v49 }
 0xd5b   :  { %616 = vrot.lane.b32.xlu0 %v614_v50, %s2250_s2 }
 0xdcd   :  { %v617_v51 = vpop.permute.xlu0 %616 }
 0xdce   :  { %619 = vst.msk [vmem:[#allocation2] sm:$0xf] %vm170_vm2, %v617_v51  ;;  %2028 = vmatmul.mubr.msk.f32.vlgmr.msra.gmra.mrb[4].mxu1 %vm58_vm0, %v617_v51 }
 0xdcf   :  { %2145 = vmatpush3.bf16.msra.mxu1 %v2138_v47  ;;  %2041 = vmatprep.mubr.msk.f32.mxu1 %vm2247_vm1, %v2248_v24 }
 0xdd0   :  { %2051 = vmatprep.subr.mxu1 %v2248_v24 }
 0xea1   :  { %v688_v52 = vpop.f32.mrb[4].mxu1 }
 0xea2   :  { %v693_v53 = vrot.slane %v688_v52, 4  ;;  %v2029_v54 = vpop.f32.mrb[5].mxu1 }
 0xea4   :  { %v695_v55 = vadd.f32 %v693_v53, %v581_v34  ;;  %v2460_v34 = vld [vmem:[%s2594_s8] ss:$0 sm:$0xff] }
 0xea6   :  { %2220 = vtanh.f32 %v695_v55  ;;  %v1908_v57 = vmul.f32 -1.442695, %v695_v55 }
 0xea8   :  { %2222 = vpow2.f32 %v1908_v57 }
 0xeb0   :  { %v2221_v56 = vpop.eup %2220 }
 0xeb1   :  { %708 = vrot.lane.b32.xlu1 %v2221_v56, %s2244_s1  ;;  %v952_v56 = vld [vmem:[%s2597_s11 + $0x8] sm:$0xff] }
 0xeb2   :  { %v2223_v58 = vpop.eup %2222 }
 0xeb3   :  { %v699_v59 = vadd.f32 1.0, %v2223_v58  ;;  %v950_v58 = vld [vmem:[%s2596_s10] sm:$0x7] }
 0xeb5   :  { %2224 = vrcp.f32 %v699_v59 }
 0xebf   :  { %v2225_v60 = vpop.eup %2224 }
 0xec0   :  { %v706_v0 = vmul.f32 %v2225_v60, %v704_v63 }
 0xf23   :  { %v709_v61 = vpop.permute.xlu1 %708 }
 0xf24   :  { %v711_v62 = vmul.f32 %v2225_v60, %v709_v61 }
 0xf26   :  { %713 = vrot.lane.b32.xlu0 %v711_v62, %s2245_s0 }
 0xf98   :  { %v714_v1 = vpop.permute.xlu0 %713 }
 0xf99   :  { %v716_v2 = vadd.f32 %v714_v1, %v706_v0 }
 0xf9b   :  { %2226 = vtanh.f32 %v716_v2  ;;  %v812_v18 = vrot.slane %v716_v2, 4 }
 0xfa5   :  { %v2227_v3 = vpop.eup %2226 }
 0xfa6   :  { %719 = vrot.lane.b32.xlu1 %v2227_v3, %s2249_s26 }
0x1018   :  { %v720_v4 = vpop.permute.xlu1 %719 }
0x1019   :  { %v722_v5 = vmul.f32 %v2225_v60, %v720_v4 }
0x101b   :  { %v728_v6 = vrot.slane %v722_v5, 4 }
0x101d   :  { %729 = vrot.lane.b32.xlu0 %v728_v6, %s2250_s2 }
0x108f   :  { %v730_v8 = vpop.permute.xlu0 %729 }
0x1090   :  { %2035 = vmatmul.mubr.msk.f32.vlgmr.msra.gmra.mrb[6].mxu0 %vm58_vm0, %v730_v8 }
0x1091   :  { %2048 = vmatprep.mubr.msk.f32.mxu0 %vm2247_vm1, %v2248_v24  ;;  %2148 = vmatpush3.bf16.msra.mxu0 %v2442_v26 }
0x1092   :  { %2149 = vmatprep.subr.bf16.mxu0 %v2246_v20 }
0x1163   :  { %v799_v9 = vpop.f32.mrb[6].mxu0 }
0x1164   :  { %v803_v10 = vadd.f32 %v799_v9, %v2404_v32  ;;  %v2036_v11 = vpop.f32.mrb[7].mxu0 }
0x1166   :  { %2228 = vtanh.f32 %v803_v10  ;;  %v1910_v13 = vmul.f32 -1.442695, %v803_v10 }
0x1168   :  { %2230 = vpow2.f32 %v1910_v13 }
0x1170   :  { %v2229_v12 = vpop.eup %2228 }
0x1171   :  { %816 = vrot.lane.b32.xlu1 %v2229_v12, %s2244_s1 }
0x1172   :  { %v2231_v14 = vpop.eup %2230 }
0x1173   :  { %v807_v15 = vadd.f32 1.0, %v2231_v14 }
0x1175   :  { %2232 = vrcp.f32 %v807_v15 }
0x117f   :  { %v2233_v16 = vpop.eup %2232 }
0x1180   :  { %v814_v19 = vmul.f32 %v2233_v16, %v812_v18  ;;  %v2529_v18 = vld [vmem:[%s2599_s13] sm:$0x1] }
0x11e3   :  { %v817_v17 = vpop.permute.xlu1 %816 }
0x11e4   :  { %v819_v7 = vmul.f32 %v2233_v16, %v817_v17 }
0x11e6   :  { %821 = vrot.lane.b32.xlu0 %v819_v7, %s2245_s0 }
0x1258   :  { %v822_v21 = vpop.permute.xlu0 %821 }
0x1259   :  { %v2433_v22 = vadd.f32 %v822_v21, %v814_v19 }
0x125b   :  { %2234 = vtanh.f32 %v2433_v22  ;;  %v920_v59 = vrot.slane %v2433_v22, 4 }
0x1265   :  { %v2235_v27 = vpop.eup %2234 }
0x1266   :  { %827 = vrot.lane.b32.xlu1 %v2235_v27, %s2249_s26 }
0x126a   :  { %724 = vrot.lane.b32.xlu1 %v722_v5, %s2250_s2  ;;  %v2518_v5 = vld [vmem:[%s2598_s12] sm:$0x7] }
0x12d8   :  { %v828_v28 = vpop.permute.xlu1 %827 }
0x12d9   :  { %v830_v29 = vmul.f32 %v2233_v16, %v828_v28 }
0x12db   :  { %832 = vrot.lane.b32.xlu0 %v830_v29, %s2250_s2 }
0x12dc   :  { %v725_v30 = vpop.permute.xlu1 %724 }
0x12dd   :  { %727 = vst.msk [vmem:[#allocation2] sm:$0xf0] %vm279_vm3, %v725_v30 }
0x12e4   :  { %v944_v31 = vld [vmem:[#allocation2] sm:$0xff] }
0x12e5   :  { %2049 = vmatmul.mubr.msk.f32.vlgmr.msra.gmra.mrb[8].mxu0 %vm58_vm0, %v944_v31  ;;  %v1202_v39 = vrot.slane %v944_v31, 4 }
0x12e6   :  { %2060 = vmatprep.mubr.msk.f32.mxu0 %vm2247_vm1, %v2248_v24 }
0x134d   :  { %v833_v33 = vpop.permute.xlu0 %832 }
0x134e   :  { %835 = vst.msk [vmem:[#allocation2 + $0x8] sm:$0xf] %vm170_vm2, %v833_v33  ;;  %2042 = vmatmul.mubr.msk.f32.vlgmr.msra.gmra.mrb[6].mxu1 %vm58_vm0, %v833_v33 }
0x134f   :  { %2053 = vmatprep.mubr.msk.f32.mxu1 %vm2247_vm1, %v2248_v24 }
0x13b8   :  { %v1030_v35 = vpop.f32.mrb[8].mxu0 }
0x13b9   :  { %v1031_v36 = vadd.f32 %v2460_v34, %v1030_v35  ;;  %v2050_v37 = vpop.f32.mrb[9].mxu0 }
0x13bb   :  { %2052 = vmatpush3.msk.msra.mxu1 %vm1043_vm4, %v1031_v36 }
0x13bc   :  { %2054 = vmatmul.mubr.msk.f32.vlgmr.msra.gmra.mrb[8].mxu1 %vm1039_vm5, %v2466_v38  ;;  %2152 = vmatprep.subr.bf16.mxu1 %v2246_v20 }
0x13bd   :  { %2154 = vmatpush3.bf16.msra.mxu1 %v2442_v26  ;;  %2067 = vmatprep.mubr.msk.f32.mxu1 %vm2247_vm1, %v2248_v24 }
0x13be   :  { %2155 = vmatprep.subr.bf16.mxu1 %v2246_v20 }
0x13c0   :  { %2068 = vmatmul.mubr.msk.f32.vlgmr.msra.gmra.mrb[10].mxu1 %vm58_vm0, %v1202_v39 }
0x13c1   :  { %2079 = vmatprep.mubr.msk.f32.mxu1 %vm2247_vm1, %v2248_v24 }
0x1421   :  { %v904_v40 = vpop.f32.mrb[6].mxu1 }
0x1422   :  { %v909_v41 = vrot.slane %v904_v40, 4  ;;  %v2043_v42 = vpop.f32.mrb[7].mxu1 }
0x1424   :  { %v911_v43 = vadd.f32 %v909_v41, %v2404_v32  ;;  %v951_v32 = vld [vmem:[%s2597_s11] sm:$0xff] }
0x1425   :  { %v2488_v57 = vpack.c.bf16 %v952_v56, %v951_v32 }
0x1426   :  { %2236 = vtanh.f32 %v911_v43  ;;  %v1912_v46 = vmul.f32 -1.442695, %v911_v43 }
0x1427   :  { %2151 = vmatpush3.bf16.msra.mxu0 %v2488_v57  ;;  %2157 = vmatpush3.bf16.msra.mxu1 %v2488_v57 }
0x1428   :  { %2238 = vpow2.f32 %v1912_v46  ;;  %2070 = vmatprep.subr.mxu0 %v2248_v24  ;;  %2089 = vmatprep.subr.mxu1 %v2248_v24 }
0x1430   :  { %v2237_v45 = vpop.eup %2236 }
0x1431   :  { %924 = vrot.lane.b32.xlu0 %v2237_v45, %s2244_s1 }
0x1432   :  { %v2239_v49 = vpop.eup %2238 }
0x1433   :  { %v915_v52 = vadd.f32 1.0, %v2239_v49 }
0x1435   :  { %2240 = vrcp.f32 %v915_v52 }
0x143f   :  { %v2241_v53 = vpop.eup %2240 }
0x1440   :  { %v922_v60 = vmul.f32 %v2241_v53, %v920_v59 }
0x148f   :  { %v1113_v47 = vpop.f32.mrb[8].mxu1 }
0x1490   :  { %v2055_v48 = vpop.f32.mrb[9].mxu1 }
0x1493   :  { %v1271_v50 = vpop.f32.mrb[10].mxu1 }
0x1494   :  { %v2069_v51 = vpop.f32.mrb[11].mxu1  ;;  %v1272_v2 = vadd.f32 %v2460_v34, %v1271_v50 }
0x14a3   :  { %v925_v54 = vpop.permute.xlu0 %924 }
0x14a4   :  { %v927_v55 = vmul.f32 %v2241_v53, %v925_v54 }
0x14a6   :  { %929 = vrot.lane.b32.xlu1 %v927_v55, %s2245_s0 }
0x14aa   :  { %1036 = vperm.xlu1 %2178, %v950_v58  }
0x1518   :  { %v930_v61 = vpop.permute.xlu1 %929 }
0x1519   :  { %v932_v62 = vadd.f32 %v930_v61, %v922_v60 }
0x151b   :  { %2242 = vtanh.f32 %v932_v62 }
0x1525   :  { %v2243_v63 = vpop.eup %2242 }
0x1526   :  { %935 = vrot.lane.b32.xlu0 %v2243_v63, %s2249_s26 }
0x1529   :  { %v2499_v0 = vpop.permute.xlu1 %1036 }
0x152a   :  { %v1114_v1 = vadd.f32 %v1113_v47, %v2499_v0 }
0x152c   :  { %2061 = vmatmul.mubr.msk.f32.vlgmr.msra.gmra.mrb[10].mxu0 %vm58_vm0, %v1114_v1 }
0x152d   :  { %2071 = vmatpush3.msk.msra.mxu0 %vm1043_vm4, %v1272_v2  ;;  %2072 = vmatprep.mubr.msk.f32.mxu0 %vm2247_vm1, %v2248_v24 }
0x152e   :  { %2158 = vmatprep.subr.bf16.mxu0 %v2246_v20 }
0x1530   :  { %2073 = vmatmul.mubr.msk.f32.vlgmr.msra.gmra.mrb[12].mxu0 %vm1039_vm5, %v2466_v38 }
0x1531   :  { %2160 = vmatpush3.bf16.msra.mxu0 %v2442_v26  ;;  %2086 = vmatprep.mubr.msk.f32.mxu0 %vm2247_vm1, %v2248_v24 }
0x1532   :  { %2161 = vmatprep.subr.bf16.mxu0 %v2246_v20 }
0x1598   :  { %v936_v3 = vpop.permute.xlu0 %935 }
0x1599   :  { %v938_v4 = vmul.f32 %v2241_v53, %v936_v3 }
0x159b   :  { %940 = vrot.lane.b32.xlu0 %v938_v4, %s2250_s2 }
0x15ff   :  { %v1186_v6 = vpop.f32.mrb[10].mxu0 }
0x1600   :  { %v1190_v8 = vmul.f32 %v1186_v6, %v2518_v5  ;;  %v2062_v9 = vpop.f32.mrb[11].mxu0 }
0x1602   :  { %v1192_v10 = vsel %vm1191_vm6, %v1190_v8, 0.0 }
0x1603   :  { %v1193_v11 = vrot.slane %v1192_v10, 4  ;;  %v1344_v12 = vpop.f32.mrb[12].mxu0 }
0x1604   :  { %v1345_v13 = vadd.f32 %v1344_v12, %v2499_v0  ;;  %v2074_v14 = vpop.f32.mrb[13].mxu0 }
0x1605   :  { %v1194_v15 = vadd.f32 %v1193_v11, %v1192_v10 }
0x1606   :  { %2080 = vmatmul.mubr.msk.f32.vlgmr.msra.gmra.mrb[12].mxu1 %vm58_vm0, %v1345_v13 }
0x1607   :  { %v1195_v16 = vrot.slane %v1194_v15, 2  ;;  %2091 = vmatprep.mubr.msk.f32.mxu1 %vm2247_vm1, %v2248_v24 }
0x1609   :  { %v1196_v17 = vadd.f32 %v1195_v16, %v1194_v15 }
0x160b   :  { %v1197_v7 = vrot.slane %v1196_v17, 1 }
0x160d   :  { %v1198_v19 = vadd.f32 %v1197_v7, %v1196_v17  ;;  %v941_v21 = vpop.permute.xlu0 %940 }
0x160e   :  { %943 = vst.msk [vmem:[#allocation2 + $0x8] sm:$0xf0] %vm279_vm3, %v941_v21 }
0x160f   :  { %v1199_v22 = vadd.f32 %v1198_v19, %v2529_v18 }
0x1611   :  { %1201 = vst.msk [vmem:[%s2600_s14] sm:$0x1] %vm1200_vm7, %v1199_v22 }
0x1615   :  { %v945_v23 = vld [vmem:[#allocation2 + $0x8] sm:$0xff] }
0x1616   :  { %2087 = vmatmul.mubr.msk.f32.vlgmr.msra.gmra.mrb[14].mxu0 %vm58_vm0, %v945_v23  ;;  %v1660_v43 = vrot.slane %v945_v23, 4 }
0x1617   :  { %2163 = vmatpush3.bf16.msra.mxu0 %v2488_v57  ;;  %2098 = vmatprep.mubr.msk.f32.mxu0 %vm2247_vm1, %v2248_v24 }
0x1618   :  { %2108 = vmatprep.subr.mxu0 %v2248_v24 }
0x16d9   :  { %v1417_v25 = vpop.f32.mrb[12].mxu1 }
0x16da   :  { %v1421_v27 = vmul.f32 %v1417_v25, %v2518_v5  ;;  %v2081_v28 = vpop.f32.mrb[13].mxu1 }
0x16dc   :  { %v1422_v29 = vsel %vm1191_vm6, %v1421_v27, 0.0 }
0x16dd   :  { %v1423_v30 = vrot.slane %v1422_v29, 4 }
0x16df   :  { %v1424_v31 = vadd.f32 %v1423_v30, %v1422_v29 }
0x16e1   :  { %v1425_v33 = vrot.slane %v1424_v31, 2 }
0x16e3   :  { %v1426_v35 = vadd.f32 %v1425_v33, %v1424_v31 }
0x16e5   :  { %v1427_v36 = vrot.slane %v1426_v35, 1 }
0x16e7   :  { %v1428_v37 = vadd.f32 %v1427_v36, %v1426_v35 }
0x16e9   :  { %v1429_v39 = vadd.f32 %v1428_v37, %v2529_v18  ;;  %v1500_v40 = vpop.f32.mrb[14].mxu0 }
0x16ea   :  { %v1501_v41 = vadd.f32 %v2460_v34, %v1500_v40  ;;  %v2088_v42 = vpop.f32.mrb[15].mxu0 }
0x16eb   :  { %1430 = vst.msk [vmem:[%s2600_s14 + $0x1] sm:$0x1] %vm1200_vm7, %v1429_v39 }
0x16ec   :  { %2090 = vmatpush3.msk.msra.mxu1 %vm1043_vm4, %v1501_v41 }
0x16ed   :  { %2092 = vmatmul.mubr.msk.f32.vlgmr.msra.gmra.mrb[14].mxu1 %vm1039_vm5, %v2466_v38  ;;  %2164 = vmatprep.subr.bf16.mxu1 %v2246_v20 }
0x16ee   :  { %2166 = vmatpush3.bf16.msra.mxu1 %v2442_v26  ;;  %2105 = vmatprep.mubr.msk.f32.mxu1 %vm2247_vm1, %v2248_v24 }
0x16ef   :  { %2167 = vmatprep.subr.bf16.mxu1 %v2246_v20 }
0x16f1   :  { %2106 = vmatmul.mubr.msk.f32.vlgmr.msra.gmra.mrb[16].mxu1 %vm58_vm0, %v1660_v43 }
0x16f2   :  { %2169 = vmatpush3.bf16.msra.mxu1 %v2488_v57  ;;  %2117 = vmatprep.mubr.msk.f32.mxu1 %vm2247_vm1, %v2248_v24 }
0x17c0   :  { %v1573_v44 = vpop.f32.mrb[14].mxu1 }
0x17c1   :  { %v1574_v45 = vadd.f32 %v1573_v44, %v2499_v0  ;;  %v2093_v46 = vpop.f32.mrb[15].mxu1 }
0x17c3   :  { %2099 = vmatmul.mubr.msk.f32.vlgmr.msra.gmra.mrb[16].mxu0 %vm58_vm0, %v1574_v45 }
0x17c4   :  { %v1729_v26 = vpop.f32.mrb[16].mxu1  ;;  %2110 = vmatprep.mubr.msk.f32.mxu0 %vm2247_vm1, %v2248_v24 }
0x17c5   :  { %v1730_v47 = vadd.f32 %v2460_v34, %v1729_v26  ;;  %v2107_v20 = vpop.f32.mrb[17].mxu1 }
0x17c7   :  { %2109 = vmatpush3.msk.msra.mxu0 %vm1043_vm4, %v1730_v47 }
0x17c8   :  { %2111 = vmatmul.mubr.msk.f32.vlgmr.msra.gmra.mrb[18].mxu0 %vm1039_vm5, %v2466_v38 }
0x1896   :  { %v1646_v48 = vpop.f32.mrb[16].mxu0 }
0x1897   :  { %v1650_v49 = vmul.f32 %v1646_v48, %v2518_v5  ;;  %v2100_v50 = vpop.f32.mrb[17].mxu0 }
0x1899   :  { %v1651_v51 = vsel %vm1191_vm6, %v1650_v49, 0.0 }
0x189a   :  { %v1652_v52 = vrot.slane %v1651_v51, 4 }
0x189b   :  { %v1802_v53 = vpop.f32.mrb[18].mxu0 }
0x189c   :  { %v1653_v54 = vadd.f32 %v1652_v52, %v1651_v51  ;;  %v1803_v55 = vadd.f32 %v1802_v53, %v2499_v0  ;;  %v2112_v24 = vpop.f32.mrb[19].mxu0 }
0x189e   :  { %v1654_v32 = vrot.slane %v1653_v54, 2  ;;  %2118 = vmatmul.mubr.msk.f32.vlgmr.msra.gmra.mrb[18].mxu1 %vm58_vm0, %v1803_v55 }
0x18a0   :  { %v1655_v34 = vadd.f32 %v1654_v32, %v1653_v54 }
0x18a2   :  { %v1656_v56 = vrot.slane %v1655_v34, 1 }
0x18a4   :  { %v1657_v57 = vadd.f32 %v1656_v56, %v1655_v34 }
0x18a6   :  { %v1658_v38 = vadd.f32 %v1657_v57, %v2529_v18 }
0x18a8   :  { %1659 = vst.msk [vmem:[%s2600_s14 + $0x2] sm:$0x1] %vm1200_vm7, %v1658_v38 }
0x1971   :  { %v1875_v58 = vpop.f32.mrb[18].mxu1 }
0x1972   :  { %v1879_v59 = vmul.f32 %v1875_v58, %v2518_v5  ;;  %v2119_v60 = vpop.f32.mrb[19].mxu1 }
0x1974   :  { %v1880_v61 = vsel %vm1191_vm6, %v1879_v59, 0.0 }
0x1975   :  { %v1881_v62 = vrot.slane %v1880_v61, 4 }
0x1977   :  { %v1882_v63 = vadd.f32 %v1881_v62, %v1880_v61 }
0x1979   :  { %v1883_v0 = vrot.slane %v1882_v63, 2 }
0x197b   :  { %v1884_v1 = vadd.f32 %v1883_v0, %v1882_v63 }
0x197d   :  { %v1885_v2 = vrot.slane %v1884_v1, 1 }
0x197f   :  { %v1886_v3 = vadd.f32 %v1885_v2, %v1884_v1 }
0x1981   :  { %v1887_v4 = vadd.f32 %v1886_v3, %v2529_v18 }
0x1983   :  { %1888 = vst.msk [vmem:[%s2600_s14 + $0x3] sm:$0x1] %vm1200_vm7, %v1887_v4 }

</bundles_post_ra>
